<compile_context>
chip_gen: v7x
topology: tpu7x:2x2x1
jax: 0.10.0
libtpu: 0.0.40
codegen_flags: <defaults>
</compile_context>

<pallas_src>
import math

import jax
import jax.numpy as jnp
from jax import lax
from jax.experimental import pallas as pl
from jax.experimental.pallas import tpu as pltpu

# ---- module hyper-parameters (EncodingLayer defaults, n_species > 1 so the
# ---- linear mixer is a real mixing) ---------------------------------------------
LMAX = 1
N_FEATURES = 8
N_SPECIES = 4
N_BASIS = 8
RMAX = 3.0
SH_DIM = (LMAX + 1) ** 2                                             # 4
FEAT_DIM = 2 * N_FEATURES * sum(2 * l + 1 for l in range(LMAX + 1))  # 64
SLAB_W = 128                       # lane-dense packed output width (multiple of 128)
_R_EPS = 1e-6
_BESSEL_PREF = math.sqrt(2.0 / RMAX)
_SQRT3 = math.sqrt(3.0)
_MAX_TILE = 2048                   # rows per grid step (multiple of 8; VMEM-safe on v7x)

# packed slab column layout (edge kernel): [vec(3) | len(1) | radial(8) | sh(4) | zero pad]
_E_VEC, _E_LEN, _E_RAD, _E_SH = 0, 3, 4, 12
_E_USED = 16
# packed slab column layout (node kernel): [node_features(64) | one_hot(4) | sh(4) | radial(8) | zero pad]
_N_FEAT, _N_OH, _N_SH, _N_RAD = 0, FEAT_DIM, FEAT_DIM + N_SPECIES, FEAT_DIM + N_SPECIES + SH_DIM
_N_USED = FEAT_DIM + N_SPECIES + SH_DIM + N_BASIS                    # 80


# ---------------------------------------------------------------------------------
# In-kernel helpers (pure jnp on values, traced inside the Pallas bodies)
# ---------------------------------------------------------------------------------
def _radial_and_sh(vec, rows):
    """Shared per-row math for a [rows, 3] vector block.

    Returns (r, radial, sh_cols):
      r       : [rows, 1]  vector norm
      radial  : [rows, N_BASIS]  Bessel basis sqrt(2/rmax)*sin(n*pi*r/rmax)/r
      sh_cols : list of [rows, 1]/[rows, ...] columns in e3nn lmax=1 order
                (normalize=True, 'component' norm): [1, sqrt(3)*uy, sqrt(3)*uz, sqrt(3)*ux]
    The reciprocal of r is computed once (EUP, approx) and reused for both.
    """
    r = jnp.sqrt(jnp.sum(vec * vec, axis=-1, keepdims=True))        # [T, 1]
    r_safe = jnp.maximum(r, _R_EPS)
    inv_r = pl.reciprocal(r_safe, approx=True)                      # shared EUP reciprocal
    u = vec * inv_r                                                 # [T, 3]
    n = (lax.broadcasted_iota(jnp.int32, (rows, N_BASIS), 1) + 1).astype(jnp.float32)
    radial = _BESSEL_PREF * jnp.sin(n * (math.pi / RMAX) * r_safe) * inv_r
    ones = jnp.ones_like(r)
    sh_cols = [ones, _SQRT3 * u[:, 1:2], _SQRT3 * u[:, 2:3], _SQRT3 * u[:, 0:1]]
    return r, radial, sh_cols


# ---------------------------------------------------------------------------------
# Pallas kernels
# ---------------------------------------------------------------------------------
def edge_encoding_kernel(pos_send_ref, pos_recv_ref, out_ref):
    """Per-edge hot path: edge vectors, lengths, radial basis, spherical harmonics.
    Output is one lane-dense [TILE, 128] slab (single unmasked store)."""
    rows = out_ref.shape[0]
    vec = pos_recv_ref[...] - pos_send_ref[...]                     # [T, 3]
    r, radial, sh_cols = _radial_and_sh(vec, rows)
    pad = jnp.zeros((rows, SLAB_W - _E_USED), jnp.float32)
    out_ref[...] = jnp.concatenate([vec, r, radial, *sh_cols, pad], axis=-1)


def node_encoding_kernel(species_ref, vel_ref, w_ref, out_ref):
    """Per-node hot path: one-hot species, velocity SH, velocity-norm basis,
    and the e3nn-Linear initial mixing into the 0e block of node_features.
    Output is one lane-dense [TILE, 128] slab."""
    rows = out_ref.shape[0]

    # one-hot atom type embedding
    iota = lax.broadcasted_iota(jnp.int32, (rows, N_SPECIES), 1)
    one_hot = (iota == species_ref[...]).astype(jnp.float32)        # [T, S]

    # velocity spherical harmonics + norm encoding (shared reciprocal)
    r, radial, sh_cols = _radial_and_sh(vel_ref[...], rows)

    # LinearTensorMixer 0e->0e path as a VPU select-sum (no MXU): exactly
    # one_hot @ W / sqrt(S), accumulated as S broadcast-multiply-adds.
    w = w_ref[...] * (1.0 / math.sqrt(N_SPECIES))                   # [S, F]
    scal = one_hot[:, 0:1] * w[0, :]
    for s in range(1, N_SPECIES):
        scal = scal + one_hot[:, s:s + 1] * w[s, :]                 # [T, F]

    feat_zeros = jnp.zeros((rows, FEAT_DIM - N_FEATURES), jnp.float32)  # 1e/0o/1o blocks
    pad = jnp.zeros((rows, SLAB_W - _N_USED), jnp.float32)
    out_ref[...] = jnp.concatenate(
        [scal, feat_zeros, one_hot, *sh_cols, radial, pad], axis=-1)


# ---------------------------------------------------------------------------------
# Wrapper (glue: gathers, row padding, slab unpacking in plain JAX)
# ---------------------------------------------------------------------------------
def _round_up(x, m):
    return ((x + m - 1) // m) * m


def _pad_rows(x, rows):
    pad = rows - x.shape[0]
    if pad == 0:
        return x
    return jnp.pad(x, ((0, pad),) + ((0, 0),) * (x.ndim - 1))


def _row_grid(n):
    tile = min(_MAX_TILE, _round_up(max(n, 1), 8))
    padded = _round_up(max(n, 1), tile)
    return tile, padded, padded // tile


_COMPILER_PARAMS = pltpu.CompilerParams(
    dimension_semantics=("parallel",),       # shards row tiles across both TCs on v7x
    vmem_limit_bytes=32 * 1024 * 1024,
)


@jax.jit
def encoding_layer_forward(positions, velocities, species, edge_index, linear_weight):
    """positions:[N,3] f32, velocities:[N,3] f32, species:[N] i32,
    edge_index:[2,E] i32 (row 0 = sender, row 1 = receiver), linear_weight:[S,F] f32."""
    n_nodes = positions.shape[0]
    n_edges = edge_index.shape[1]

    # ---- edge path -------------------------------------------------------------
    # Endpoint gather stays in XLA (pure indexing glue).
    # TODO(synk): for production-scale graphs, gather in-kernel from VMEM-resident
    # positions to cut edge-path HBM input traffic ~3x.
    pos_send = positions[edge_index[0]].astype(jnp.float32)         # [E, 3]
    pos_recv = positions[edge_index[1]].astype(jnp.float32)         # [E, 3]

    tile_e, e_pad, grid_e = _row_grid(n_edges)
    edge_cost = pl.CostEstimate(
        flops=e_pad * 100,
        transcendentals=e_pad * (N_BASIS + 2),
        bytes_accessed=e_pad * (2 * 3 * 4 + SLAB_W * 4),
    )
    edge_slab = pl.pallas_call(
        edge_encoding_kernel,
        grid=(grid_e,),
        in_specs=[
            pl.BlockSpec((tile_e, 3), lambda i: (i, 0)),
            pl.BlockSpec((tile_e, 3), lambda i: (i, 0)),
        ],
        out_specs=pl.BlockSpec((tile_e, SLAB_W), lambda i: (i, 0)),
        out_shape=jax.ShapeDtypeStruct((e_pad, SLAB_W), jnp.float32),
        compiler_params=_COMPILER_PARAMS,
        cost_estimate=edge_cost,
    )(_pad_rows(pos_send, e_pad), _pad_rows(pos_recv, e_pad))

    # ---- node path -------------------------------------------------------------
    tile_n, n_pad, grid_n = _row_grid(n_nodes)
    node_cost = pl.CostEstimate(
        flops=n_pad * 150,
        transcendentals=n_pad * (N_BASIS + 2),
        bytes_accessed=n_pad * (4 + 3 * 4 + SLAB_W * 4) + N_SPECIES * N_FEATURES * 4,
    )
    node_slab = pl.pallas_call(
        node_encoding_kernel,
        grid=(grid_n,),
        in_specs=[
            pl.BlockSpec((tile_n, 1), lambda i: (i, 0)),
            pl.BlockSpec((tile_n, 3), lambda i: (i, 0)),
            pl.BlockSpec((N_SPECIES, N_FEATURES), lambda i: (0, 0)),   # weight resident
        ],
        out_specs=pl.BlockSpec((tile_n, SLAB_W), lambda i: (i, 0)),
        out_shape=jax.ShapeDtypeStruct((n_pad, SLAB_W), jnp.float32),
        compiler_params=_COMPILER_PARAMS,
        cost_estimate=node_cost,
    )(
        _pad_rows(species.reshape(n_nodes, 1).astype(jnp.int32), n_pad),
        _pad_rows(velocities.astype(jnp.float32), n_pad),
        linear_weight.astype(jnp.float32),
    )

    # ---- unpack lane-dense slabs into the AtomicGraph-like output dict ----------
    return {
        "edge_vectors": edge_slab[:n_edges, _E_VEC:_E_VEC + 3],            # compute_edge_vectors()
        "edge_lengths": edge_slab[:n_edges, _E_LEN:_E_LEN + 1],
        "edge_radial_embedding": edge_slab[:n_edges, _E_RAD:_E_RAD + N_BASIS],   # EdgeLengthEncoding
        "edge_spherical_harmonics": edge_slab[:n_edges, _E_SH:_E_SH + SH_DIM],   # SH(edge_vectors)
        "atom_type_embedding": node_slab[:n_nodes, _N_OH:_N_OH + N_SPECIES],     # OneHotAtomTypeEncoding
        "velocity_spherical_harmonics": node_slab[:n_nodes, _N_SH:_N_SH + SH_DIM],  # SH(velocities)
        "velocity_norm_embedding": node_slab[:n_nodes, _N_RAD:_N_RAD + N_BASIS],    # TensorNormEncoding
        "node_features": node_slab[:n_nodes, _N_FEAT:_N_FEAT + FEAT_DIM],           # LinearTensorMixer
    }
    # TODO(synk): timestep_encoding=False branch only; TimestepEncoding not instantiated.


# ---------------------------------------------------------------------------------
if __name__ == "__main__":
    N_NODES, N_EDGES = 8, 16

    key = jax.random.PRNGKey(0)
    k_pos, k_vel, k_sp, k_edge, k_w = jax.random.split(key, 5)

    positions = jax.random.uniform(k_pos, (N_NODES, 3), jnp.float32,
                                   minval=0.0, maxval=RMAX)
    velocities = jax.random.normal(k_vel, (N_NODES, 3), jnp.float32)
    species = jax.random.randint(k_sp, (N_NODES,), 0, N_SPECIES, jnp.int32)
    edge_index = jax.random.randint(k_edge, (2, N_EDGES), 0, N_NODES, jnp.int32)
    # deterministic parameter init for the e3nn Linear 0e->0e path (standard normal, as e3nn does)
    linear_weight = jax.random.normal(k_w, (N_SPECIES, N_FEATURES), jnp.float32)

    out = encoding_layer_forward(positions, velocities, species, edge_index, linear_weight)
    jax.block_until_ready(out)

    # shape checks
    assert out["edge_vectors"].shape == (N_EDGES, 3)
    assert out["edge_lengths"].shape == (N_EDGES, 1)
    assert out["edge_radial_embedding"].shape == (N_EDGES, N_BASIS)
    assert out["edge_spherical_harmonics"].shape == (N_EDGES, SH_DIM)
    assert out["atom_type_embedding"].shape == (N_NODES, N_SPECIES)
    assert out["velocity_spherical_harmonics"].shape == (N_NODES, SH_DIM)
    assert out["velocity_norm_embedding"].shape == (N_NODES, N_BASIS)
    assert out["node_features"].shape == (N_NODES, FEAT_DIM)

    # exact structural sanity checks (no approximate math involved)
    import numpy as np
    assert np.all(np.asarray(out["node_features"])[:, N_FEATURES:] == 0.0)      # 1e/0o/1o blocks zero
    assert np.allclose(np.asarray(out["atom_type_embedding"]).sum(-1), 1.0)     # valid one-hot rows
    assert np.all(np.asarray(out["edge_spherical_harmonics"])[:, 0] == 1.0)     # Y00 = 1 (component norm)

    print("KERNEL_OK")
</pallas_src>

<mosaic_0001>
module attributes {stable_mosaic.version = 11 : i64} {
  func.func @edge_encoding_kernel(%arg0: i32, %arg1: memref<16x3xf32, #tpu.memory_space<vmem>>, %arg2: memref<16x3xf32, #tpu.memory_space<vmem>>, %arg3: memref<16x128xf32, #tpu.memory_space<vmem>>) attributes {dimension_semantics = [#tpu.dimension_semantics<parallel>], iteration_bounds = array<i64: 1>, scalar_prefetch = 0 : i64, scratch_operands = 0 : i64, tpu.core_type = #tpu.core_type<tc>, window_params = [{transform_indices = @transform_0, window_bounds = array<i64: 16, 3>}, {transform_indices = @transform_1, window_bounds = array<i64: 16, 3>}, {transform_indices = @transform_2, window_bounds = array<i64: 16, 128>}]} {
    %c0 = arith.constant 0 : index
    %c0_0 = arith.constant 0 : index
    %0 = vector.load %arg2[%c0, %c0_0] : memref<16x3xf32, #tpu.memory_space<vmem>>, vector<16x3xf32>
    %c0_1 = arith.constant 0 : index
    %c0_2 = arith.constant 0 : index
    %1 = vector.load %arg1[%c0_1, %c0_2] : memref<16x3xf32, #tpu.memory_space<vmem>>, vector<16x3xf32>
    %2 = arith.subf %0, %1 : vector<16x3xf32>
    %3 = arith.mulf %2, %2 : vector<16x3xf32>
    %cst = arith.constant dense<0.000000e+00> : vector<16xf32>
    %4 = vector.multi_reduction <add>, %3, %cst [1] : vector<16x3xf32> to vector<16xf32>
    %5 = vector.shape_cast %4 : vector<16xf32> to vector<16x1xf32>
    %6 = math.sqrt %5 : vector<16x1xf32>
    %cst_3 = arith.constant 9.99999997E-7 : f32
    %7 = vector.broadcast %cst_3 : f32 to vector<16x1xf32>
    %8 = arith.maximumf %6, %7 : vector<16x1xf32>
    %9 = tpu.reciprocal %8 {approx = true} : vector<16x1xf32> -> vector<16x1xf32>
    %10 = vector.broadcast %9 : vector<16x1xf32> to vector<16x3xf32>
    %11 = arith.mulf %2, %10 : vector<16x3xf32>
    %12 = tpu.iota {dimensions = array<i32: 1>} : vector<16x8xi32>
    %c1_i32 = arith.constant 1 : i32
    %13 = vector.broadcast %c1_i32 : i32 to vector<16x8xi32>
    %14 = arith.addi %12, %13 : vector<16x8xi32>
    %15 = arith.sitofp %14 : vector<16x8xi32> to vector<16x8xf32>
    %cst_4 = arith.constant 1.04719758 : f32
    %16 = vector.broadcast %cst_4 : f32 to vector<16x8xf32>
    %17 = arith.mulf %15, %16 : vector<16x8xf32>
    %18 = vector.broadcast %8 : vector<16x1xf32> to vector<16x8xf32>
    %19 = arith.mulf %17, %18 : vector<16x8xf32>
    %20 = math.sin %19 : vector<16x8xf32>
    %cst_5 = arith.constant 0.816496611 : f32
    %21 = vector.broadcast %cst_5 : f32 to vector<16x8xf32>
    %22 = arith.mulf %21, %20 : vector<16x8xf32>
    %23 = vector.broadcast %9 : vector<16x1xf32> to vector<16x8xf32>
    %24 = arith.mulf %22, %23 : vector<16x8xf32>
    %cst_6 = arith.constant 1.000000e+00 : f32
    %25 = vector.broadcast %cst_6 : f32 to vector<16x1xf32>
    %26 = vector.extract_strided_slice %11 {offsets = [0, 1], sizes = [16, 1], strides = [1, 1]} : vector<16x3xf32> to vector<16x1xf32>
    %cst_7 = arith.constant 1.73205078 : f32
    %27 = vector.broadcast %cst_7 : f32 to vector<16x1xf32>
    %28 = arith.mulf %27, %26 : vector<16x1xf32>
    %29 = vector.extract_strided_slice %11 {offsets = [0, 2], sizes = [16, 1], strides = [1, 1]} : vector<16x3xf32> to vector<16x1xf32>
    %cst_8 = arith.constant 1.73205078 : f32
    %30 = vector.broadcast %cst_8 : f32 to vector<16x1xf32>
    %31 = arith.mulf %30, %29 : vector<16x1xf32>
    %32 = vector.extract_strided_slice %11 {offsets = [0, 0], sizes = [16, 1], strides = [1, 1]} : vector<16x3xf32> to vector<16x1xf32>
    %cst_9 = arith.constant 1.73205078 : f32
    %33 = vector.broadcast %cst_9 : f32 to vector<16x1xf32>
    %34 = arith.mulf %33, %32 : vector<16x1xf32>
    %cst_10 = arith.constant 0.000000e+00 : f32
    %35 = vector.broadcast %cst_10 : f32 to vector<16x112xf32>
    %36 = tpu.concatenate %2, %6, %24, %25, %28, %31, %34, %35 in 1 : vector<16x3xf32>, vector<16x1xf32>, vector<16x8xf32>, vector<16x1xf32>, vector<16x1xf32>, vector<16x1xf32>, vector<16x1xf32>, vector<16x112xf32> -> vector<16x128xf32>
    %c0_11 = arith.constant 0 : index
    %c0_12 = arith.constant 0 : index
    %37 = vector.load %arg3[%c0_11, %c0_12] : memref<16x128xf32, #tpu.memory_space<vmem>>, vector<16x128xf32>
    tpu.vector_store %arg3[%c0_11, %c0_12], %36 {strides = array<i32>} : memref<16x128xf32, #tpu.memory_space<vmem>>, vector<16x128xf32>,
    return
  }
  func.func @transform_0(%arg0: i32) -> (i32, i32) {
    %c0_i32 = arith.constant 0 : i32
    %c0_i32_0 = arith.constant 0 : i32
    return %arg0, %c0_i32 : i32, i32
  }
  func.func @transform_1(%arg0: i32) -> (i32, i32) {
    %c0_i32 = arith.constant 0 : i32
    %c0_i32_0 = arith.constant 0 : i32
    return %arg0, %c0_i32 : i32, i32
  }
  func.func @transform_2(%arg0: i32) -> (i32, i32) {
    %c0_i32 = arith.constant 0 : i32
    %c0_i32_0 = arith.constant 0 : i32
    return %arg0, %c0_i32 : i32, i32
  }
}

module attributes {stable_mosaic.version = 11 : i64} {
  func.func @node_encoding_kernel(%arg0: i32, %arg1: memref<8x1xi32, #tpu.memory_space<vmem>>, %arg2: memref<8x3xf32, #tpu.memory_space<vmem>>, %arg3: memref<4x8xf32, #tpu.memory_space<vmem>>, %arg4: memref<8x128xf32, #tpu.memory_space<vmem>>) attributes {dimension_semantics = [#tpu.dimension_semantics<parallel>], iteration_bounds = array<i64: 1>, scalar_prefetch = 0 : i64, scratch_operands = 0 : i64, tpu.core_type = #tpu.core_type<tc>, window_params = [{transform_indices = @transform_0, window_bounds = array<i64: 8, 1>}, {transform_indices = @transform_1, window_bounds = array<i64: 8, 3>}, {pipeline_mode = #tpu.pipeline_mode<synchronous>, transform_indices = @transform_2, window_bounds = array<i64: 4, 8>}, {transform_indices = @transform_3, window_bounds = array<i64: 8, 128>}]} {
    %0 = tpu.iota {dimensions = array<i32: 1>} : vector<8x4xi32>
    %c0 = arith.constant 0 : index
    %c0_0 = arith.constant 0 : index
    %1 = vector.load %arg1[%c0, %c0_0] : memref<8x1xi32, #tpu.memory_space<vmem>>, vector<8x1xi32>
    %2 = vector.broadcast %1 : vector<8x1xi32> to vector<8x4xi32>
    %3 = arith.cmpi eq, %0, %2 : vector<8x4xi32>
    %4 = arith.extui %3 : vector<8x4xi1> to vector<8x4xi32>
    %5 = arith.sitofp %4 : vector<8x4xi32> to vector<8x4xf32>
    %c0_1 = arith.constant 0 : index
    %c0_2 = arith.constant 0 : index
    %6 = vector.load %arg2[%c0_1, %c0_2] : memref<8x3xf32, #tpu.memory_space<vmem>>, vector<8x3xf32>
    %7 = arith.mulf %6, %6 : vector<8x3xf32>
    %cst = arith.constant dense<0.000000e+00> : vector<8xf32>
    %8 = vector.multi_reduction <add>, %7, %cst [1] : vector<8x3xf32> to vector<8xf32>
    %9 = vector.shape_cast %8 : vector<8xf32> to vector<8x1xf32>
    %10 = math.sqrt %9 : vector<8x1xf32>
    %cst_3 = arith.constant 9.99999997E-7 : f32
    %11 = vector.broadcast %cst_3 : f32 to vector<8x1xf32>
    %12 = arith.maximumf %10, %11 : vector<8x1xf32>
    %13 = tpu.reciprocal %12 {approx = true} : vector<8x1xf32> -> vector<8x1xf32>
    %14 = vector.broadcast %13 : vector<8x1xf32> to vector<8x3xf32>
    %15 = arith.mulf %6, %14 : vector<8x3xf32>
    %16 = tpu.iota {dimensions = array<i32: 1>} : vector<8x8xi32>
    %c1_i32 = arith.constant 1 : i32
    %17 = vector.broadcast %c1_i32 : i32 to vector<8x8xi32>
    %18 = arith.addi %16, %17 : vector<8x8xi32>
    %19 = arith.sitofp %18 : vector<8x8xi32> to vector<8x8xf32>
    %cst_4 = arith.constant 1.04719758 : f32
    %20 = vector.broadcast %cst_4 : f32 to vector<8x8xf32>
    %21 = arith.mulf %19, %20 : vector<8x8xf32>
    %22 = vector.broadcast %12 : vector<8x1xf32> to vector<8x8xf32>
    %23 = arith.mulf %21, %22 : vector<8x8xf32>
    %24 = math.sin %23 : vector<8x8xf32>
    %cst_5 = arith.constant 0.816496611 : f32
    %25 = vector.broadcast %cst_5 : f32 to vector<8x8xf32>
    %26 = arith.mulf %25, %24 : vector<8x8xf32>
    %27 = vector.broadcast %13 : vector<8x1xf32> to vector<8x8xf32>
    %28 = arith.mulf %26, %27 : vector<8x8xf32>
    %cst_6 = arith.constant 1.000000e+00 : f32
    %29 = vector.broadcast %cst_6 : f32 to vector<8x1xf32>
    %30 = vector.extract_strided_slice %15 {offsets = [0, 1], sizes = [8, 1], strides = [1, 1]} : vector<8x3xf32> to vector<8x1xf32>
    %cst_7 = arith.constant 1.73205078 : f32
    %31 = vector.broadcast %cst_7 : f32 to vector<8x1xf32>
    %32 = arith.mulf %31, %30 : vector<8x1xf32>
    %33 = vector.extract_strided_slice %15 {offsets = [0, 2], sizes = [8, 1], strides = [1, 1]} : vector<8x3xf32> to vector<8x1xf32>
    %cst_8 = arith.constant 1.73205078 : f32
    %34 = vector.broadcast %cst_8 : f32 to vector<8x1xf32>
    %35 = arith.mulf %34, %33 : vector<8x1xf32>
    %36 = vector.extract_strided_slice %15 {offsets = [0, 0], sizes = [8, 1], strides = [1, 1]} : vector<8x3xf32> to vector<8x1xf32>
    %cst_9 = arith.constant 1.73205078 : f32
    %37 = vector.broadcast %cst_9 : f32 to vector<8x1xf32>
    %38 = arith.mulf %37, %36 : vector<8x1xf32>
    %c0_10 = arith.constant 0 : index
    %c0_11 = arith.constant 0 : index
    %39 = vector.load %arg3[%c0_10, %c0_11] : memref<4x8xf32, #tpu.memory_space<vmem>>, vector<4x8xf32>
    %cst_12 = arith.constant 5.000000e-01 : f32
    %40 = vector.broadcast %cst_12 : f32 to vector<4x8xf32>
    %41 = arith.mulf %39, %40 : vector<4x8xf32>
    %42 = vector.extract_strided_slice %5 {offsets = [0, 0], sizes = [8, 1], strides = [1, 1]} : vector<8x4xf32> to vector<8x1xf32>
    %43 = vector.extract_strided_slice %41 {offsets = [0, 0], sizes = [1, 8], strides = [1, 1]} : vector<4x8xf32> to vector<1x8xf32>
    %44 = vector.shape_cast %43 : vector<1x8xf32> to vector<8xf32>
    %45 = vector.shape_cast %44 : vector<8xf32> to vector<1x8xf32>
    %46 = vector.broadcast %42 : vector<8x1xf32> to vector<8x8xf32>
    %47 = vector.broadcast %45 : vector<1x8xf32> to vector<8x8xf32>
    %48 = arith.mulf %46, %47 : vector<8x8xf32>
    %49 = vector.extract_strided_slice %5 {offsets = [0, 1], sizes = [8, 1], strides = [1, 1]} : vector<8x4xf32> to vector<8x1xf32>
    %50 = vector.extract_strided_slice %41 {offsets = [1, 0], sizes = [1, 8], strides = [1, 1]} : vector<4x8xf32> to vector<1x8xf32>
    %51 = vector.shape_cast %50 : vector<1x8xf32> to vector<8xf32>
    %52 = vector.shape_cast %51 : vector<8xf32> to vector<1x8xf32>
    %53 = vector.broadcast %49 : vector<8x1xf32> to vector<8x8xf32>
    %54 = vector.broadcast %52 : vector<1x8xf32> to vector<8x8xf32>
    %55 = arith.mulf %53, %54 : vector<8x8xf32>
    %56 = arith.addf %48, %55 : vector<8x8xf32>
    %57 = vector.extract_strided_slice %5 {offsets = [0, 2], sizes = [8, 1], strides = [1, 1]} : vector<8x4xf32> to vector<8x1xf32>
    %58 = vector.extract_strided_slice %41 {offsets = [2, 0], sizes = [1, 8], strides = [1, 1]} : vector<4x8xf32> to vector<1x8xf32>
    %59 = vector.shape_cast %58 : vector<1x8xf32> to vector<8xf32>
    %60 = vector.shape_cast %59 : vector<8xf32> to vector<1x8xf32>
    %61 = vector.broadcast %57 : vector<8x1xf32> to vector<8x8xf32>
    %62 = vector.broadcast %60 : vector<1x8xf32> to vector<8x8xf32>
    %63 = arith.mulf %61, %62 : vector<8x8xf32>
    %64 = arith.addf %56, %63 : vector<8x8xf32>
    %65 = vector.extract_strided_slice %5 {offsets = [0, 3], sizes = [8, 1], strides = [1, 1]} : vector<8x4xf32> to vector<8x1xf32>
    %66 = vector.extract_strided_slice %41 {offsets = [3, 0], sizes = [1, 8], strides = [1, 1]} : vector<4x8xf32> to vector<1x8xf32>
    %67 = vector.shape_cast %66 : vector<1x8xf32> to vector<8xf32>
    %68 = vector.shape_cast %67 : vector<8xf32> to vector<1x8xf32>
    %69 = vector.broadcast %65 : vector<8x1xf32> to vector<8x8xf32>
    %70 = vector.broadcast %68 : vector<1x8xf32> to vector<8x8xf32>
    %71 = arith.mulf %69, %70 : vector<8x8xf32>
    %72 = arith.addf %64, %71 : vector<8x8xf32>
    %cst_13 = arith.constant 0.000000e+00 : f32
    %73 = vector.broadcast %cst_13 : f32 to vector<8x56xf32>
    %cst_14 = arith.constant 0.000000e+00 : f32
    %74 = vector.broadcast %cst_14 : f32 to vector<8x48xf32>
    %75 = tpu.concatenate %72, %73, %5, %29, %32, %35, %38, %28, %74 in 1 : vector<8x8xf32>, vector<8x56xf32>, vector<8x4xf32>, vector<8x1xf32>, vector<8x1xf32>, vector<8x1xf32>, vector<8x1xf32>, vector<8x8xf32>, vector<8x48xf32> -> vector<8x128xf32>
    %c0_15 = arith.constant 0 : index
    %c0_16 = arith.constant 0 : index
    %76 = vector.load %arg4[%c0_15, %c0_16] : memref<8x128xf32, #tpu.memory_space<vmem>>, vector<8x128xf32>
    tpu.vector_store %arg4[%c0_15, %c0_16], %75 {strides = array<i32>} : memref<8x128xf32, #tpu.memory_space<vmem>>, vector<8x128xf32>,
    return
  }
  func.func @transform_0(%arg0: i32) -> (i32, i32) {
    %c0_i32 = arith.constant 0 : i32
    %c0_i32_0 = arith.constant 0 : i32
    return %arg0, %c0_i32 : i32, i32
  }
  func.func @transform_1(%arg0: i32) -> (i32, i32) {
    %c0_i32 = arith.constant 0 : i32
    %c0_i32_0 = arith.constant 0 : i32
    return %arg0, %c0_i32 : i32, i32
  }
  func.func @transform_2(%arg0: i32) -> (i32, i32) {
    %c0_i32 = arith.constant 0 : i32
    %c0_i32_0 = arith.constant 0 : i32
    %c0_i32_1 = arith.constant 0 : i32
    return %c0_i32, %c0_i32_0 : i32, i32
  }
  func.func @transform_3(%arg0: i32) -> (i32, i32) {
    %c0_i32 = arith.constant 0 : i32
    %c0_i32_0 = arith.constant 0 : i32
    return %arg0, %c0_i32 : i32, i32
  }
}

</mosaic_0001>

<bundles_post_ra>
// kernel: encoding_layer_forward.3
= control target key start
LH: loop header
LB: loop body
LE: loop exit
PB: predicated region body
PF: predicated region fallthrough
CT: control target
= control target key end

     0   :  { %vm25_vm0 = vcmask 23552   ;;  %v265_v1 = vmov 0   ;;  %v266_v5 = vmov 3   ;;  %v14_v7 = vlaneseq  ;;  %s278_s16 = smov 71   ;;  %s279_s17 = smov 72   ;;  %s339_s1 = inlined_call_operand.vmem [shape: f32[8,3], index: 1, kind: input, shape index: {}]   ;;  %s340_s0 = inlined_call_operand.vmem [shape: s32[8,1], index: 0, kind: input, shape index: {}]   ;;  %s341_s2 = inlined_call_operand.vmem [shape: f32[4,8], index: 2, kind: input, shape index: {}]   ;;  %s342_s3 = inlined_call_operand.vmem [shape: f32[8,128], index: 3, kind: output, shape index: {}]  }
   0x1   :  { %v23_v0 = vld [vmem:[%s339_s1] sm:$0xff]  ;;  %251 = vset.pattern.permute.xlu0 %v265_v1  ;;  %252 = vset.pattern.permute.xlu1 %v265_v1  ;;  %v267_v12 = vmov 0.0   ;;  %v268_v20 = vmov 1   ;;  %v269_v24 = vmov 2   ;;  %v271_v37 = vmov 683565275  }
   0x2   :  { %v24_v2 = vmul.f32 %v23_v0, %v23_v0  ;;  %v16_v4 = vld [vmem:[%s340_s0] sm:$0xff]  ;;  %v15_v8 = vand.u32 127, %v14_v7  ;;  %s270_s0 = smov 64   ;;  %v272_v39 = vmov 2475754826   ;;  %s273_s1 = smov 68  }
   0x3   :  { %v274_v42 = vmov 2131351028   ;;  %v275_v45 = vmov 2102212464   ;;  %v276_v48 = vmov 920167782  }
   0x4   :  { %v26_v3 = vsel %vm25_vm0, %v24_v2, 0.0  ;;  %v39_v9 = vadd.s32 1, %v15_v8  ;;  %v277_v51 = vmov 1326507024  }
   0x5   :  { %27 = vadd.xlane.f32.xlu0 %v26_v3 }
   0x6   :  { %v40_v11 = vcvt.s32.f32 %v39_v9 }
   0x8   :  { %v41_v18 = vmul.f32 1.0471976, %v40_v11 }
  0x1b   :  { %18 = vperm.xlu0 %251, %v16_v4  }
  0x1f   :  { %256 = vset.pattern.permute.xlu0 %v266_v5 }
  0x92   :  { %v28_v6 = vpop.xlane.xlu0 %27 }
  0x93   :  { %257 = vrsqrt.f32 %v28_v6  ;;  %vm31_vm2 = vcmp.eq.f32.partialorder %v28_v6, inf  ;;  %v34_v16 = vand.u32 2147483648, %v28_v6  ;;  %vm33_vm3 = vcmp.eq.f32.partialorder %v28_v6, 0.0 }
  0x9a   :  { %v19_v10 = vpop.permute.xlu0 %18 }
  0x9b   :  { %vm20_vm1 = vcmp.eq.s32.totalorder %v15_v8, %v19_v10 }
  0x9c   :  { %v227_v13 = vsel %vm20_vm1, 1.0, %v267_v12  ;;  %vm206_vm1 = vcmask 64512  }
  0x9d   :  { %v258_v14 = vpop.eup %257  ;;  %154 = vperm.xlu1 %252, %v227_v13  }
  0x9e   :  { %v30_v15 = vmul.f32 %v258_v14, %v28_v6 }
  0xa0   :  { %v32_v17 = vsel %vm31_vm2, %v28_v6, %v30_v15  ;;  %vm208_vm2 = vcmask 523264  }
  0xa1   :  { %v35_v19 = vsel %vm33_vm3, %v34_v16, %v32_v17  ;;  %253 = vset.pattern.permute.xlu1 %v268_v20  ;;  %vm210_vm3 = vcmask 556032  }
  0xa2   :  { %v36_v21 = vmax.f32 %v35_v19, 1e-06  ;;  %163 = vperm.xlu1 %253, %v227_v13  }
  0xa4   :  { %259 = vrcp.f32 %v36_v21  ;;  %v307_v22 = vmul.f32 %v41_v18, %v36_v21 }
  0xa6   :  { %v46_v23 = vand.u32 2139095040, %v307_v22  ;;  %254 = vset.pattern.permute.xlu1 %v269_v24  ;;  %v43_v29 = vand.u32 2147483647, %v307_v22  ;;  %vm45_vm11 = vcmp.lt.s32.totalorder %v307_v22, 0  ;;  %vm135_vm0 = vweird.f32 %v307_v22 }
  0xa7   :  { %173 = vperm.xlu1 %254, %v227_v13  }
  0xa8   :  { %v47_v25 = vshrl.u32 %v46_v23, 23  ;;  %v50_v35 = vand.u32 8388607, %v43_v29  ;;  %vm44_vm12 = vcmp.le.f32.partialorder %v43_v29, 0.7853982 }
  0xaa   :  { %v228_v26 = vadd.s32 4294967169, %v47_v25  ;;  %v51_v53 = vor.u32 8388608, %v50_v35 }
  0xab   :  { %255 = vset.pattern.permute.xlu1 %v266_v5 }
  0xac   :  { %v53_v27 = vadd.s32 1, %v228_v26  ;;  %183 = vperm.xlu1 %255, %v227_v13   ;;  %v91_v3 = vshll.u32 %v51_v53, 8 }
  0xae   :  { %v310_v28 = vpop.eup %259  ;;  %vm54_vm4 = vcmp.gt.s32.totalorder %v53_v27, 0 }
  0xaf   :  { %v55_v30 = vsel %vm54_vm4, %v53_v27, 0  ;;  %v38_v31 = vmul.f32 %v310_v28, %v23_v0  ;;  %vm212_vm4 = vcmask 564224  }
  0xb0   :  { %v57_v32 = vand.u32 31, %v55_v30  ;;  %192 = vrot.lane.b32.xlu1 %v227_v13, %s270_s0  ;;  %v56_v36 = vshrl.u32 %v55_v30, 5 }
  0xb1   :  { %v149_v33 = vmul.f32 1.7320508, %v38_v31 }
  0xb2   :  { %v58_v34 = vsub.s32 32, %v57_v32  ;;  %v60_v38 = vshll.u32 %v271_v37, %v57_v32  ;;  %v63_v40 = vshll.u32 %v272_v39, %v57_v32  ;;  %v66_v44 = vshll.u32 %v274_v42, %v57_v32 }
  0xb3   :  { %v69_v47 = vshll.u32 %v275_v45, %v57_v32  ;;  %v72_v50 = vshll.u32 %v276_v48, %v57_v32  ;;  %vm75_vm5 = vcmp.lt.s32.totalorder %v56_v36, 1  ;;  %vm78_vm6 = vcmp.lt.s32.totalorder %v56_v36, 4 }
  0xb4   :  { %196 = vrot.lane.b32.xlu1 %v149_v33, %s273_s1  ;;  %v61_v41 = vshrl.u32 %v272_v39, %v58_v34  ;;  %v64_v43 = vshrl.u32 %v274_v42, %v58_v34  ;;  %v67_v46 = vshrl.u32 %v275_v45, %v58_v34  ;;  %v70_v49 = vshrl.u32 %v276_v48, %v58_v34 }
  0xb5   :  { %v73_v52 = vshrl.u32 %v277_v51, %v58_v34  ;;  %v59_v62 = vshrl.u32 %v271_v37, %v58_v34  ;;  %vm77_vm7 = vcmp.lt.s32.totalorder %v56_v36, 3  ;;  %vm76_vm8 = vcmp.lt.s32.totalorder %v56_v36, 2 }
  0xb6   :  { %v62_v54 = vor.u32 %v61_v41, %v60_v38  ;;  %v65_v55 = vor.u32 %v64_v43, %v63_v40  ;;  %v68_v56 = vor.u32 %v67_v46, %v66_v44  ;;  %v71_v57 = vor.u32 %v70_v49, %v69_v47 }
  0xb7   :  { %v74_v58 = vor.u32 %v73_v52, %v72_v50 }
  0xb8   :  { %199 = vrot.lane.b32.xlu1 %v149_v33, %s278_s16  ;;  %v80_v59 = vsel %vm78_vm6, %v68_v56, 2102212464  ;;  %v83_v60 = vsel %vm75_vm5, %v62_v54, %v65_v55  ;;  %v87_v61 = vsel %vm75_vm5, %v65_v55, %v68_v56  ;;  %v84_v63 = vsel %vm78_vm6, %v71_v57, 920167782 }
  0xb9   :  { %v88_v0 = vsel %vm78_vm6, %v74_v58, 1326507024  ;;  %v85_v1 = vsel %vm77_vm7, %v68_v56, %v84_v63  ;;  %v79_v4 = vsel %vm75_vm5, %v59_v62, %v62_v54  ;;  %v81_v5 = vsel %vm77_vm7, %v65_v55, %v80_v59 }
  0xba   :  { %v89_v2 = vsel %vm77_vm7, %v71_v57, %v88_v0  ;;  %v86_v6 = vsel %vm76_vm8, %v83_v60, %v85_v1  ;;  %v82_v13 = vsel %vm76_vm8, %v79_v4, %v81_v5  ;;  %v158_v60 = vshrl.u32 %v14_v7, 7 }
  0xbb   :  { %v90_v8 = vsel %vm76_vm8, %v87_v61, %v89_v2  ;;  %v319_v11 = vmul.u32.u64.low %v91_v3, %v86_v6  ;;  %v320_v12 = vmul.u32.u64.high %v91_v3, %v86_v6, %v319_v11  ;;  %v98_v15 = vmul.u32 %v91_v3, %v82_v13  ;;  %v150_v61 = vld [vmem:[%s341_s2] sm:$0xf] }
  0xbc   :  { %v316_v9 = vmul.u32.u64.low %v91_v3, %v90_v8  ;;  %v317_v10 = vmul.u32.u64.high %v91_v3, %v90_v8, %v316_v9  ;;  %v151_v62 = vmul.f32 0.5, %v150_v61  ;;  %v159_v63 = vsub.s32 0, %v158_v60 }
  0xbd   :  { %v101_v14 = vadd.s32 1, %v320_v12  ;;  %v168_v0 = vsub.s32 1, %v158_v60  ;;  %v178_v3 = vsub.s32 2, %v158_v60  ;;  %v188_v8 = vsub.s32 3, %v158_v60 }
  0xbe   :  { %vm100_vm9 = vc.u32 %v317_v10, %v319_v11  ;;  %v99_v30 = vadd.s32 %v319_v11, %v317_v10  ;;  %v160_v2 = vrot.slane %v151_v62, %v159_v63  ;;  %vm214_vm5 = vcmask 572416  }
  0xbf   :  { %v102_v16 = vsel %vm100_vm9, %v101_v14, %v320_v12  ;;  %v189_v11 = vrot.slane %v151_v62, %v188_v8  ;;  %vm216_vm6 = vcmask 580608   ;;  %vm218_vm7 = vcmask 588800  }
  0xc0   :  { %v103_v17 = vadd.s32 %v102_v16, %v98_v15  ;;  %vm220_vm8 = vcmask 654336  }
  0xc2   :  { %v104_v18 = vadd.s32 536870912, %v103_v17 }
  0xc4   :  { %v105_v19 = vshrl.u32 %v104_v18, 30 }
  0xc6   :  { %v106_v20 = vshll.u32 %v105_v19, 30  ;;  %v129_v42 = vsub.s32 4, %v105_v19 }
  0xc8   :  { %v107_v21 = vsub.s32 %v103_v17, %v106_v20  ;;  %v130_v45 = vsel %vm45_vm11, %v129_v42, %v105_v19 }
  0xc9   :  { %v132_v47 = vsel %vm44_vm12, 0, %v130_v45 }
  0xca   :  { %v109_v23 = vsub.s32 0, %v107_v21  ;;  %v136_v48 = vadd.s32 3, %v132_v47 }
  0xcc   :  { %v229_v24 = vmin.u32 %v109_v23, %v107_v21  ;;  %v137_v49 = vand.u32 3, %v136_v48 }
  0xce   :  { %v111_v25 = vclz %v229_v24  ;;  %vm142_vm13 = vcmp.eq.s32.totalorder %v137_v49, 2  ;;  %vm139_vm14 = vcmp.eq.s32.totalorder %v137_v49, 0  ;;  %vm138_vm15 = vcmp.lt.s32.totalorder %v137_v49, 2 }
  0xd0   :  { %v230_v26 = vadd.s32 4294967294, %v111_v25 }
  0xd2   :  { %vm231_vm10 = vcmp.lt.s32.totalorder %v230_v26, 0 }
  0xd3   :  { %v114_v27 = vsel %vm231_vm10, 0, %v230_v26 }
  0xd4   :  { %v115_v31 = vsub.s32 32, %v114_v27  ;;  %v119_v32 = vsub.s32 4294967266, %v114_v27  ;;  %v116_v33 = vshll.u32 %v107_v21, %v114_v27 }
  0xd6   :  { %v117_v34 = vshrl.u32 %v99_v30, %v115_v31  ;;  %v120_v35 = vadd.s32 127, %v119_v32 }
  0xd8   :  { %v118_v36 = vor.u32 %v117_v34, %v116_v33  ;;  %v121_v37 = vshll.u32 %v120_v35, 23 }
  0xda   :  { %v122_v38 = vor.u32 4788187, %v121_v37  ;;  %v125_v40 = vcvt.s32.f32 %v118_v36 }
  0xdc   :  { %v123_v39 = vand.u32 2147483647, %v122_v38 }
  0xde   :  { %v126_v41 = vmul.f32 %v125_v40, %v123_v39 }
  0xe0   :  { %v127_v43 = vxor.u32 2147483648, %v126_v41 }
  0xe2   :  { %v128_v44 = vsel %vm45_vm11, %v127_v43, %v126_v41 }
  0xe3   :  { %v131_v46 = vsel %vm44_vm12, %v307_v22, %v128_v44  ;;  %v169_v22 = vrot.slane %v151_v62, %v168_v0 }
  0xe4   :  { %261 = vcosq.f32 %v131_v46 }
  0xe5   :  { %263 = vsinq.f32 %v131_v46 }
  0xee   :  { %v262_v50 = vpop.eup %261 }
  0xef   :  { %v264_v51 = vpop.eup %263  ;;  %v143_v52 = vxor.u32 2147483648, %v262_v50 }
  0xf0   :  { %v140_v53 = vxor.u32 2147483648, %v264_v51 }
  0xf1   :  { %v144_v54 = vsel %vm142_vm13, %v143_v52, %v264_v51 }
  0xf2   :  { %v141_v55 = vsel %vm139_vm14, %v262_v50, %v140_v53 }
  0xf3   :  { %v145_v29 = vsel %vm138_vm15, %v141_v55, %v144_v54 }
  0xf4   :  { %v146_v56 = vsel %vm135_vm0, nan, %v145_v29 }
  0xf5   :  { %v147_v57 = vmul.f32 0.8164966, %v146_v56 }
  0xf7   :  { %v148_v58 = vmul.f32 %v310_v28, %v147_v57  ;;  %v179_v28 = vrot.slane %v151_v62, %v178_v3 }
  0xf9   :  { %203 = vrot.lane.b32.xlu1 %v148_v58, %s279_s17 }
 0x11c   :  { %v155_v59 = vpop.permute.xlu1 %154 }
 0x11d   :  { %v161_v5 = vmul.f32 %v160_v2, %v155_v59 }
 0x121   :  { %v164_v1 = vpop.permute.xlu1 %163 }
 0x122   :  { %v170_v6 = vmul.f32 %v169_v22, %v164_v1 }
 0x124   :  { %v171_v9 = vadd.f32 %v170_v6, %v161_v5 }
 0x126   :  { %v174_v4 = vpop.permute.xlu1 %173 }
 0x127   :  { %v180_v10 = vmul.f32 %v179_v28, %v174_v4 }
 0x129   :  { %v181_v12 = vadd.f32 %v180_v10, %v171_v9 }
 0x12b   :  { %v184_v7 = vpop.permute.xlu1 %183 }
 0x12c   :  { %v190_v13 = vmul.f32 %v189_v11, %v184_v7 }
 0x12e   :  { %v191_v14 = vadd.f32 %v190_v13, %v181_v12 }
 0x12f   :  { %v193_v15 = vpop.permute.xlu1 %192 }
 0x130   :  { %v207_v16 = vsel %vm206_vm1, %v191_v14, 0.0 }
 0x131   :  { %v209_v17 = vsel %vm208_vm2, %v207_v16, %v193_v15 }
 0x132   :  { %v211_v19 = vsel %vm210_vm3, %v209_v17, 1.0 }
 0x133   :  { %v197_v18 = vpop.permute.xlu1 %196 }
 0x134   :  { %v213_v20 = vsel %vm212_vm4, %v211_v19, %v197_v18 }
 0x135   :  { %v215_v23 = vsel %vm214_vm5, %v213_v20, %v197_v18 }
 0x137   :  { %v200_v21 = vpop.permute.xlu1 %199 }
 0x138   :  { %v217_v24 = vsel %vm216_vm6, %v215_v23, %v200_v21 }
 0x16b   :  { %v204_v25 = vpop.permute.xlu1 %203 }
 0x16c   :  { %v219_v26 = vsel %vm218_vm7, %v217_v24, %v204_v25 }
 0x16d   :  { %v221_v27 = vsel %vm220_vm8, %v219_v26, 0.0 }
 0x16e   :  { %222 = vst [vmem:[%s342_s3] sm:$0xff] %v221_v27 }

// kernel: encoding_layer_forward.2
= control target key start
LH: loop header
LB: loop body
LE: loop exit
PB: predicated region body
PF: predicated region fallthrough
CT: control target
= control target key end

     0   :  { %vm19_vm0 = vcmask 23552   ;;  %v46_v10 = vlaneseq  ;;  %v356_v53 = vmov 683565275   ;;  %v358_v57 = vmov 2475754826   ;;  %s364_s17 = smov 4   ;;  %s512_s0 = inlined_call_operand.vmem [shape: f32[16,3], index: 0, kind: input, shape index: {}]   ;;  %s513_s1 = inlined_call_operand.vmem [shape: f32[16,3], index: 1, kind: input, shape index: {}]   ;;  %s514_s2 = inlined_call_operand.vmem [shape: f32[16,128], index: 2, kind: output, shape index: {}]  }
   0x1   :  { %v11_v0 = vld [vmem:[%s513_s1] sm:$0xff]  ;;  %v12_v2 = vld [vmem:[%s513_s1 + $0x8] sm:$0xff]  ;;  %v359_v59 = vmov 2131351028   ;;  %s363_s1 = smov 15  }
   0x2   :  { %v13_v1 = vld [vmem:[%s512_s0] sm:$0xff]  ;;  %v14_v4 = vld [vmem:[%s512_s0 + $0x8] sm:$0xff]  ;;  %v47_v12 = vand.u32 127, %v46_v10  ;;  %s357_s0 = smov 12  }
   0x3   :  { %v389_v3 = vsub.f32 %v11_v0, %v13_v1  ;;  %v394_v5 = vsub.f32 %v12_v2, %v14_v4  ;;  %v360_v0 = vmov 2102212464  }
   0x4   :  { %v48_v14 = vadd.s32 1, %v47_v12 }
   0x5   :  { %v17_v6 = vmul.f32 %v389_v3, %v389_v3  ;;  %v18_v7 = vmul.f32 %v394_v5, %v394_v5 }
   0x6   :  { %v49_v15 = vcvt.s32.f32 %v48_v14 }
   0x7   :  { %v20_v8 = vsel %vm19_vm0, %v17_v6, 0.0  ;;  %v23_v9 = vsel %vm19_vm0, %v18_v7, 0.0  ;;  %v361_v7 = vmov 920167782  }
   0x8   :  { %21 = vadd.xlane.f32.xlu0 %v20_v8  ;;  %v50_v19 = vmul.f32 1.0471976, %v49_v15 }
   0xc   :  { %24 = vadd.xlane.f32.xlu0 %v23_v9 }
  0x95   :  { %v22_v11 = vpop.xlane.xlu0 %21 }
  0x96   :  { %340 = vrsqrt.f32 %v22_v11  ;;  %vm28_vm1 = vcmp.eq.f32.partialorder %v22_v11, inf  ;;  %v31_v18 = vand.u32 2147483648, %v22_v11  ;;  %vm30_vm2 = vcmp.eq.f32.partialorder %v22_v11, 0.0 }
  0x99   :  { %v25_v13 = vpop.xlane.xlu0 %24 }
  0x9a   :  { %342 = vrsqrt.f32 %v25_v13  ;;  %vm35_vm3 = vcmp.eq.f32.partialorder %v25_v13, inf  ;;  %v38_v25 = vand.u32 2147483648, %v25_v13  ;;  %vm37_vm4 = vcmp.eq.f32.partialorder %v25_v13, 0.0 }
  0xa0   :  { %v341_v16 = vpop.eup %340 }
  0xa1   :  { %v27_v17 = vmul.f32 %v341_v16, %v22_v11 }
  0xa3   :  { %v29_v20 = vsel %vm28_vm1, %v22_v11, %v27_v17  ;;  %v362_v11 = vmov 1326507024  }
  0xa4   :  { %v343_v21 = vpop.eup %342  ;;  %v402_v22 = vsel %vm30_vm2, %v31_v18, %v29_v20 }
  0xa5   :  { %v40_v23 = vmax.f32 %v402_v22, 1e-06  ;;  %v34_v24 = vmul.f32 %v343_v21, %v25_v13 }
  0xa7   :  { %v405_v26 = vmul.f32 %v50_v19, %v40_v23  ;;  %v36_v27 = vsel %vm35_vm3, %v25_v13, %v34_v24  ;;  %344 = vrcp.f32 %v40_v23 }
  0xa8   :  { %v407_v28 = vsel %vm37_vm4, %v38_v25, %v36_v27 }
  0xa9   :  { %v56_v29 = vand.u32 2139095040, %v405_v26  ;;  %v41_v30 = vmax.f32 %v407_v28, 1e-06  ;;  %v53_v31 = vand.u32 2147483647, %v405_v26  ;;  %vm55_vm4 = vcmp.lt.s32.totalorder %v405_v26, 0 }
  0xab   :  { %v57_v32 = vshrl.u32 %v56_v29, 23  ;;  %346 = vrcp.f32 %v41_v30  ;;  %v412_v33 = vmul.f32 %v50_v19, %v41_v30  ;;  %v60_v34 = vand.u32 8388607, %v53_v31 }
  0xad   :  { %v315_v35 = vadd.s32 4294967169, %v57_v32  ;;  %v160_v36 = vand.u32 2139095040, %v412_v33  ;;  %v61_v39 = vor.u32 8388608, %v60_v34  ;;  %v157_v40 = vand.u32 2147483647, %v412_v33 }
  0xaf   :  { %v63_v37 = vadd.s32 1, %v315_v35  ;;  %v161_v38 = vshrl.u32 %v160_v36, 23  ;;  %v422_v48 = vshll.u32 %v61_v39, 8  ;;  %v426_v49 = vand.u32 8388607, %v157_v40 }
  0xb1   :  { %v418_v41 = vpop.eup %344  ;;  %vm64_vm5 = vcmp.gt.s32.totalorder %v63_v37, 0  ;;  %v319_v42 = vadd.s32 4294967169, %v161_v38  ;;  %v165_v34 = vor.u32 8388608, %v426_v49 }
  0xb2   :  { %v65_v43 = vsel %vm64_vm5, %v63_v37, 0  ;;  %v44_v44 = vmul.f32 %v418_v41, %v389_v3  ;;  %vm54_vm5 = vcmp.le.f32.partialorder %v53_v31, 0.7853982 }
  0xb3   :  { %v67_v45 = vand.u32 31, %v65_v43  ;;  %v167_v46 = vadd.s32 1, %v319_v42  ;;  %v66_v51 = vshrl.u32 %v65_v43, 5 }
  0xb4   :  { %v265_v47 = vmul.f32 1.7320508, %v44_v44 }
  0xb5   :  { %v428_v50 = vpop.eup %346  ;;  %vm168_vm6 = vcmp.gt.s32.totalorder %v167_v46, 0  ;;  %v68_v52 = vsub.s32 32, %v67_v45  ;;  %v70_v54 = vshll.u32 %v356_v53, %v67_v45  ;;  %v73_v58 = vshll.u32 %v358_v57, %v67_v45 }
  0xb6   :  { %277 = vrot.lane.b32.xlu0 %v265_v47, %s357_s0  ;;  %v45_v55 = vmul.f32 %v428_v50, %v394_v5  ;;  %v169_v56 = vsel %vm168_vm6, %v167_v46, 0  ;;  %v76_v60 = vshll.u32 %v359_v59, %v67_v45  ;;  %v79_v1 = vshll.u32 %v360_v0, %v67_v45 }
  0xb7   :  { %v171_v61 = vand.u32 31, %v169_v56  ;;  %v69_v62 = vshrl.u32 %v356_v53, %v68_v52  ;;  %v71_v63 = vshrl.u32 %v358_v57, %v68_v52  ;;  %v74_v4 = vshrl.u32 %v359_v59, %v68_v52 }
  0xb8   :  { %v434_v2 = vmul.f32 1.7320508, %v45_v55  ;;  %v77_v6 = vshrl.u32 %v360_v0, %v68_v52  ;;  %v80_v8 = vshrl.u32 %v361_v7, %v68_v52  ;;  %v82_v10 = vshll.u32 %v361_v7, %v67_v45 }
  0xb9   :  { %v72_v9 = vor.u32 %v71_v63, %v70_v54  ;;  %v83_v12 = vshrl.u32 %v362_v11, %v68_v52  ;;  %vm85_vm7 = vcmp.lt.s32.totalorder %v66_v51, 1  ;;  %v75_v13 = vor.u32 %v74_v4, %v73_v58 }
  0xba   :  { %279 = vrot.lane.b32.xlu1 %v434_v2, %s357_s0  ;;  %v78_v14 = vor.u32 %v77_v6, %v76_v60  ;;  %v81_v15 = vor.u32 %v80_v8, %v79_v1  ;;  %vm86_vm8 = vcmp.lt.s32.totalorder %v66_v51, 2  ;;  %vm87_vm9 = vcmp.lt.s32.totalorder %v66_v51, 3 }
  0xbb   :  { %v84_v16 = vor.u32 %v83_v12, %v82_v10  ;;  %vm88_vm10 = vcmp.lt.s32.totalorder %v66_v51, 4  ;;  %v89_v17 = vsel %vm85_vm7, %v69_v62, %v72_v9  ;;  %v93_v19 = vsel %vm85_vm7, %v72_v9, %v75_v13 }
  0xbc   :  { %v90_v18 = vsel %vm88_vm10, %v78_v14, 2102212464  ;;  %v94_v20 = vsel %vm88_vm10, %v81_v15, 920167782  ;;  %v97_v21 = vsel %vm85_vm7, %v75_v13, %v78_v14  ;;  %v172_v27 = vsub.s32 32, %v171_v61 }
  0xbd   :  { %v91_v23 = vsel %vm87_vm9, %v75_v13, %v90_v18  ;;  %v95_v24 = vsel %vm87_vm9, %v78_v14, %v94_v20  ;;  %v98_v25 = vsel %vm88_vm10, %v84_v16, 1326507024  ;;  %v170_v29 = vshrl.u32 %v169_v56, 5 }
  0xbe   :  { %283 = vrot.lane.b32.xlu1 %v265_v47, %s363_s1  ;;  %v96_v30 = vsel %vm86_vm8, %v93_v19, %v95_v24  ;;  %v99_v32 = vsel %vm87_vm9, %v81_v15, %v98_v25  ;;  %v92_v35 = vsel %vm86_vm8, %v89_v17, %v91_v23  ;;  %v174_v43 = vshll.u32 %v356_v53, %v171_v61 }
  0xbf   :  { %v100_v36 = vsel %vm86_vm8, %v97_v21, %v99_v32  ;;  %v443_v37 = vmul.u32.u64.low %v422_v48, %v96_v30  ;;  %v444_v38 = vmul.u32.u64.high %v422_v48, %v96_v30, %v443_v37  ;;  %v175_v44 = vshrl.u32 %v358_v57, %v172_v27 }
  0xc0   :  { %v448_v39 = vmul.u32.u64.low %v422_v48, %v100_v36  ;;  %v449_v42 = vmul.u32.u64.high %v422_v48, %v100_v36, %v448_v39  ;;  %v177_v45 = vshll.u32 %v358_v57, %v171_v61  ;;  %v178_v46 = vshrl.u32 %v359_v59, %v172_v27 }
  0xc1   :  { %v180_v47 = vshll.u32 %v359_v59, %v171_v61  ;;  %v181_v49 = vshrl.u32 %v360_v0, %v172_v27  ;;  %v176_v52 = vor.u32 %v175_v44, %v174_v43  ;;  %v183_v54 = vshll.u32 %v360_v0, %v171_v61 }
  0xc2   :  { %v184_v51 = vshrl.u32 %v361_v7, %v172_v27  ;;  %v186_v55 = vshll.u32 %v361_v7, %v171_v61  ;;  %v111_v56 = vadd.s32 1, %v444_v38  ;;  %v179_v58 = vor.u32 %v178_v46, %v177_v45 }
  0xc3   :  { %v182_v60 = vor.u32 %v181_v49, %v180_v47  ;;  %v187_v62 = vshrl.u32 %v362_v11, %v172_v27  ;;  %v108_v63 = vmul.u32 %v422_v48, %v92_v35  ;;  %vm110_vm11 = vc.u32 %v449_v42, %v443_v37 }
  0xc4   :  { %v185_v1 = vor.u32 %v184_v51, %v183_v54  ;;  %v205_v4 = vshll.u32 %v165_v34, 8  ;;  %v112_v57 = vsel %vm110_vm11, %v111_v56, %v444_v38  ;;  %v173_v59 = vshrl.u32 %v356_v53, %v172_v27 }
  0xc5   :  { %v188_v6 = vor.u32 %v187_v62, %v186_v55  ;;  %vm189_vm12 = vcmp.lt.s32.totalorder %v170_v29, 1  ;;  %v113_v0 = vadd.s32 %v112_v57, %v108_v63  ;;  %vm191_vm13 = vcmp.lt.s32.totalorder %v170_v29, 3 }
  0xc6   :  { %vm192_vm14 = vcmp.lt.s32.totalorder %v170_v29, 4  ;;  %v197_v61 = vsel %vm189_vm12, %v176_v52, %v179_v58  ;;  %v201_v9 = vsel %vm189_vm12, %v179_v58, %v182_v60  ;;  %vm190_vm15 = vcmp.lt.s32.totalorder %v170_v29, 2 }
  0xc7   :  { %v194_v7 = vsel %vm192_vm14, %v182_v60, 2102212464  ;;  %v198_v8 = vsel %vm192_vm14, %v185_v1, 920167782  ;;  %v202_v10 = vsel %vm192_vm14, %v188_v6, 1326507024  ;;  %v193_v13 = vsel %vm189_vm12, %v173_v59, %v176_v52 }
  0xc8   :  { %v114_v48 = vadd.s32 536870912, %v113_v0  ;;  %v199_v11 = vsel %vm191_vm13, %v182_v60, %v198_v8  ;;  %v203_v12 = vsel %vm191_vm13, %v185_v1, %v202_v10  ;;  %v195_v17 = vsel %vm191_vm13, %v179_v58, %v194_v7 }
  0xc9   :  { %v200_v14 = vsel %vm190_vm15, %v197_v61, %v199_v11  ;;  %v204_v15 = vsel %vm190_vm15, %v201_v9, %v203_v12  ;;  %v196_v23 = vsel %vm190_vm15, %v193_v13, %v195_v17  ;;  %v109_v45 = vadd.s32 %v443_v37, %v449_v42 }
  0xca   :  { %v115_v16 = vshrl.u32 %v114_v48, 30  ;;  %v458_v53 = vmul.u32.u64.low %v205_v4, %v204_v15  ;;  %v459_v18 = vmul.u32.u64.high %v205_v4, %v204_v15, %v458_v53  ;;  %v212_v29 = vmul.u32 %v205_v4, %v196_v23 }
  0xcb   :  { %v461_v19 = vmul.u32.u64.low %v205_v4, %v200_v14  ;;  %v462_v20 = vmul.u32.u64.high %v205_v4, %v200_v14, %v461_v19  ;;  %vm159_vm6 = vcmp.lt.s32.totalorder %v412_v33, 0  ;;  %vm477_vm7 = vcmp.le.f32.partialorder %v157_v40, 0.7853982 }
  0xcc   :  { %v116_v21 = vshll.u32 %v115_v16, 30  ;;  %v139_v6 = vsub.s32 4, %v115_v16  ;;  %vm145_vm11 = vweird.f32 %v405_v26  ;;  %vm249_vm15 = vweird.f32 %v412_v33 }
  0xcd   :  { %vm214_vm1 = vc.u32 %v459_v18, %v461_v19  ;;  %v215_v25 = vadd.s32 1, %v462_v20  ;;  %v213_v42 = vadd.s32 %v461_v19, %v459_v18 }
  0xce   :  { %v117_v24 = vsub.s32 %v113_v0, %v116_v21  ;;  %v140_v9 = vsel %vm55_vm4, %v139_v6, %v115_v16 }
  0xcf   :  { %v216_v30 = vsel %vm214_vm1, %v215_v25, %v462_v20  ;;  %v142_v13 = vsel %vm54_vm5, 0, %v140_v9  ;;  %vm291_vm1 = vcmask 31744  }
  0xd0   :  { %v119_v27 = vsub.s32 0, %v117_v24  ;;  %v217_v34 = vadd.s32 %v216_v30, %v212_v29  ;;  %v146_v53 = vadd.s32 3, %v142_v13 }
  0xd2   :  { %v316_v32 = vmin.u32 %v119_v27, %v117_v24  ;;  %v218_v36 = vadd.s32 536870912, %v217_v34  ;;  %v147_v23 = vand.u32 3, %v146_v53 }
  0xd4   :  { %v121_v35 = vclz %v316_v32  ;;  %v219_v39 = vshrl.u32 %v218_v36, 30  ;;  %vm152_vm8 = vcmp.eq.s32.totalorder %v147_v23, 2  ;;  %vm149_vm9 = vcmp.eq.s32.totalorder %v147_v23, 0 }
  0xd5   :  { %vm148_vm10 = vcmp.lt.s32.totalorder %v147_v23, 2 }
  0xd6   :  { %v317_v38 = vadd.s32 4294967294, %v121_v35  ;;  %v220_v44 = vshll.u32 %v219_v39, 30  ;;  %v243_v21 = vsub.s32 4, %v219_v39 }
  0xd8   :  { %vm318_vm2 = vcmp.lt.s32.totalorder %v317_v38, 0  ;;  %v221_v49 = vsub.s32 %v217_v34, %v220_v44  ;;  %v244_v30 = vsel %vm159_vm6, %v243_v21, %v219_v39 }
  0xd9   :  { %v124_v43 = vsel %vm318_vm2, 0, %v317_v38  ;;  %v246_v38 = vsel %vm477_vm7, 0, %v244_v30  ;;  %vm294_vm2 = vcmask 97280  }
  0xda   :  { %v125_v46 = vsub.s32 32, %v124_v43  ;;  %v129_v47 = vsub.s32 4294967266, %v124_v43  ;;  %v126_v52 = vshll.u32 %v117_v24, %v124_v43  ;;  %v223_v55 = vsub.s32 0, %v221_v49 }
  0xdb   :  { %v250_v44 = vadd.s32 3, %v246_v38 }
  0xdc   :  { %v127_v54 = vshrl.u32 %v109_v45, %v125_v46  ;;  %v130_v51 = vadd.s32 127, %v129_v47  ;;  %v320_v60 = vmin.u32 %v223_v55, %v221_v49 }
  0xdd   :  { %v251_v46 = vand.u32 3, %v250_v44 }
  0xde   :  { %v128_v56 = vor.u32 %v127_v54, %v126_v52  ;;  %v131_v58 = vshll.u32 %v130_v51, 23  ;;  %v225_v63 = vclz %v320_v60 }
  0xdf   :  { %vm256_vm12 = vcmp.eq.s32.totalorder %v251_v46, 2  ;;  %vm253_vm13 = vcmp.eq.s32.totalorder %v251_v46, 0  ;;  %vm252_vm14 = vcmp.lt.s32.totalorder %v251_v46, 2 }
  0xe0   :  { %v132_v62 = vor.u32 4788187, %v131_v58  ;;  %v135_v4 = vcvt.s32.f32 %v128_v56  ;;  %v321_v57 = vadd.s32 4294967294, %v225_v63  ;;  %v289_v63 = vsel %vm19_vm0, %v389_v3, %v402_v22 }
  0xe1   :  { %v290_v3 = vsel %vm19_vm0, %v394_v5, %v407_v28 }
  0xe2   :  { %v133_v1 = vand.u32 2147483647, %v132_v62  ;;  %vm322_vm3 = vcmp.lt.s32.totalorder %v321_v57, 0 }
  0xe3   :  { %v228_v37 = vsel %vm322_vm3, 0, %v321_v57  ;;  %vm297_vm3 = vcmask 105472  }
  0xe4   :  { %v136_v59 = vmul.f32 %v135_v4, %v133_v1  ;;  %v229_v61 = vsub.s32 32, %v228_v37  ;;  %v233_v7 = vsub.s32 4294967266, %v228_v37  ;;  %v230_v48 = vshll.u32 %v221_v49, %v228_v37 }
  0xe6   :  { %v137_v0 = vxor.u32 2147483648, %v136_v59  ;;  %v231_v11 = vshrl.u32 %v213_v42, %v229_v61  ;;  %v234_v12 = vadd.s32 127, %v233_v7 }
  0xe8   :  { %v138_v8 = vsel %vm55_vm4, %v137_v0, %v136_v59  ;;  %v232_v14 = vor.u32 %v231_v11, %v230_v48  ;;  %v235_v15 = vshll.u32 %v234_v12, 23  ;;  %vm300_vm4 = vcmask 113664  }
  0xe9   :  { %v141_v10 = vsel %vm54_vm5, %v405_v26, %v138_v8  ;;  %vm303_vm5 = vcmask 121856  }
  0xea   :  { %348 = vcosq.f32 %v141_v10  ;;  %v236_v17 = vor.u32 4788187, %v235_v15  ;;  %v239_v19 = vcvt.s32.f32 %v232_v14 }
  0xeb   :  { %350 = vsinq.f32 %v141_v10 }
  0xec   :  { %v237_v18 = vand.u32 2147483647, %v236_v17 }
  0xee   :  { %v240_v20 = vmul.f32 %v239_v19, %v237_v18 }
  0xf0   :  { %v241_v31 = vxor.u32 2147483648, %v240_v20 }
  0xf2   :  { %v242_v29 = vsel %vm159_vm6, %v241_v31, %v240_v20  ;;  %vm306_vm6 = vcmask 130048  }
  0xf3   :  { %v245_v34 = vsel %vm477_vm7, %v412_v33, %v242_v29 }
  0xf4   :  { %v349_v24 = vpop.eup %348  ;;  %352 = vcosq.f32 %v245_v34 }
  0xf5   :  { %v351_v16 = vpop.eup %350  ;;  %v153_v25 = vxor.u32 2147483648, %v349_v24  ;;  %354 = vsinq.f32 %v245_v34 }
  0xf6   :  { %v150_v32 = vxor.u32 2147483648, %v351_v16 }
  0xf7   :  { %v154_v35 = vsel %vm152_vm8, %v153_v25, %v351_v16 }
  0xf8   :  { %v151_v36 = vsel %vm149_vm9, %v349_v24, %v150_v32 }
  0xf9   :  { %v155_v40 = vsel %vm148_vm10, %v151_v36, %v154_v35 }
  0xfa   :  { %v156_v43 = vsel %vm145_vm11, nan, %v155_v40 }
  0xfb   :  { %v261_v39 = vmul.f32 0.8164966, %v156_v43 }
  0xfd   :  { %v263_v45 = vmul.f32 %v418_v41, %v261_v39 }
  0xfe   :  { %v353_v47 = vpop.eup %352 }
  0xff   :  { %269 = vrot.lane.b32.xlu1 %v263_v45, %s364_s17  ;;  %v355_v49 = vpop.eup %354  ;;  %v257_v52 = vxor.u32 2147483648, %v353_v47 }
 0x100   :  { %v254_v54 = vxor.u32 2147483648, %v355_v49 }
 0x101   :  { %v258_v51 = vsel %vm256_vm12, %v257_v52, %v355_v49 }
 0x102   :  { %v255_v55 = vsel %vm253_vm13, %v353_v47, %v254_v54 }
 0x103   :  { %v259_v26 = vsel %vm252_vm14, %v255_v55, %v258_v51 }
 0x104   :  { %v260_v56 = vsel %vm249_vm15, nan, %v259_v26 }
 0x105   :  { %v262_v58 = vmul.f32 0.8164966, %v260_v56 }
 0x107   :  { %v264_v60 = vmul.f32 %v428_v50, %v262_v58 }
 0x109   :  { %271 = vrot.lane.b32.xlu1 %v264_v60, %s364_s17 }
 0x10d   :  { %285 = vrot.lane.b32.xlu1 %v434_v2, %s363_s1 }
 0x128   :  { %v278_v4 = vpop.permute.xlu0 %277 }
 0x12c   :  { %v280_v41 = vpop.permute.xlu1 %279 }
 0x130   :  { %v284_v62 = vpop.permute.xlu1 %283 }
 0x171   :  { %v270_v1 = vpop.permute.xlu1 %269 }
 0x172   :  { %v292_v33 = vsel %vm291_vm1, %v289_v63, %v270_v1 }
 0x173   :  { %v295_v50 = vsel %vm294_vm2, %v292_v33, 1.0 }
 0x174   :  { %v298_v57 = vsel %vm297_vm3, %v295_v50, %v278_v4 }
 0x175   :  { %v301_v2 = vsel %vm300_vm4, %v298_v57, %v278_v4 }
 0x176   :  { %v304_v59 = vsel %vm303_vm5, %v301_v2, %v284_v62 }
 0x177   :  { %v307_v6 = vsel %vm306_vm6, %v304_v59, 0.0 }
 0x178   :  { %309 = vst [vmem:[%s514_s2] sm:$0xff] %v307_v6 }
 0x17b   :  { %v272_v22 = vpop.permute.xlu1 %271 }
 0x17c   :  { %v293_v0 = vsel %vm291_vm1, %v290_v3, %v272_v22 }
 0x17d   :  { %v296_v37 = vsel %vm294_vm2, %v293_v0, 1.0 }
 0x17e   :  { %v299_v42 = vsel %vm297_vm3, %v296_v37, %v280_v41 }
 0x17f   :  { %v302_v61 = vsel %vm300_vm4, %v299_v42, %v280_v41  ;;  %v286_v7 = vpop.permute.xlu1 %285 }
 0x180   :  { %v305_v8 = vsel %vm303_vm5, %v302_v61, %v286_v7 }
 0x181   :  { %v308_v9 = vsel %vm306_vm6, %v305_v8, 0.0 }
 0x182   :  { %310 = vst [vmem:[%s514_s2 + $0x8] sm:$0xff] %v308_v9 }

</bundles_post_ra>
